<compile_context>
chip_gen: v6e
topology: v6e:2x2x1
jax: 0.10.0
libtpu: 0.0.40
codegen_flags: <defaults>
</compile_context>

<pallas_src>
import functools

import jax
import jax.numpy as jnp
from jax.experimental import pallas as pl
from jax.experimental.pallas import tpu as pltpu

LANE = 128


def _round_up(v, m):
    return ((v + m - 1) // m) * m


def mlp_kernel(x_ref, w1_ref, b1_ref, w2_ref, b2_ref, w3_ref, b3_ref, o_ref):
    """Feature-major MLP tile: all activations are (features, batch_tile)."""
    nx, tb = x_ref.shape
    h = w1_ref.shape[0]

    x = x_ref[...]                                    # (Nx, tb) f32

    # ---- fc1 -> ReLU ----
    if nx <= 8:
        # Tiny contraction dim: unrolled outer-product FMAs on the VPU keep
        # the MXU free for fc2/fc3 (K=4 would badly under-fill an MXU pass).
        w1 = w1_ref[...]                              # (H, Nx) f32
        h1 = jnp.broadcast_to(b1_ref[...], (h, tb))   # (H, tb), hoisted bcast
        for k in range(nx):                           # static unroll
            h1 = h1 + w1[:, k:k + 1] * x[k:k + 1, :]
    else:
        h1 = jnp.dot(w1_ref[...], x,
                     preferred_element_type=jnp.float32) + b1_ref[...]
    h1 = jnp.maximum(h1, 0.0)

    # ---- fc2 -> ReLU (MXU, low-precision operands, f32 accumulation) ----
    h2 = jnp.dot(w2_ref[...], h1.astype(w2_ref.dtype),
                 preferred_element_type=jnp.float32)
    h2 = jnp.maximum(h2 + b2_ref[...], 0.0)

    # ---- fc3 -> Tanh: only the Nu real rows, lane-dense (Nu, tb) store ----
    h3 = jnp.dot(w3_ref[...], h2.astype(w3_ref.dtype),
                 preferred_element_type=jnp.float32)
    o_ref[...] = jnp.tanh(h3 + b3_ref[...]).astype(o_ref.dtype)


def _choose_tile(batch, tb, num_cores):
    """Batch tile (in lanes): multiple of 128, generation-aware split."""
    batch = max(int(batch), 1)
    full = _round_up(batch, LANE)
    tb_eff = max(LANE, min(_round_up(int(tb), LANE), full))
    if num_cores > 1 and full > LANE:
        # Dual-TC (v7x): target >= 2 pipelined grid steps per TensorCore so
        # the x-load / output-writeback DMAs overlap with compute.
        target = max(LANE, _round_up(-(-batch // (2 * num_cores)), LANE))
        tb_eff = min(tb_eff, target)
    # Single-TC (v5e/v6e): never split a batch that already fits one tile.
    return tb_eff


def _detect_num_tensorcores():
    """Best-effort TensorCore count per chip (v7x has 2); safe fallback 1."""
    try:
        d = jax.local_devices()[0]
        if d.platform != "tpu":
            return 1
        for attr in ("num_cores", "core_count", "num_tensorcores"):
            v = getattr(d, attr, None)
            if isinstance(v, int) and 1 <= v <= 8:
                return v
        kind = str(getattr(d, "device_kind", "")).lower()
        if "v7" in kind:
            return 2
    except Exception:
        pass
    return 1


def prepare_params(w1, b1, w2, b2, w3, b3, *, compute_dtype=jnp.bfloat16):
    """One-time weight preparation (hoisted out of the per-call hot path).

    Weights are expected as (in_features, out_features) [the `x @ W`
    convention, i.e. the transpose of PyTorch's nn.Linear.weight]; biases as
    (out,) or (1, out).  Returns feature-major, pre-cast device arrays.
    """
    def col(b):
        return jnp.asarray(b, jnp.float32).reshape(-1, 1)

    w1_t = jnp.asarray(w1, jnp.float32).T              # (H, Nx) f32 (VPU path)
    w2_t = jnp.asarray(w2).T.astype(compute_dtype)     # (H, H)
    w3_t = jnp.asarray(w3).T.astype(compute_dtype)     # (Nu, H)
    return (w1_t, col(b1), w2_t, col(b2), w3_t, col(b3))


def _nn_forward_impl(x, params, *, tb, out_dtype, num_cores):
    w1_t, b1_t, w2_t, b2_t, w3_t, b3_t = params
    B, nx = x.shape
    H = w1_t.shape[0]
    nu = w3_t.shape[0]

    tb_eff = _choose_tile(B, tb, num_cores)
    Bp = _round_up(B, tb_eff)

    x_t = x.T.astype(jnp.float32)                      # (Nx, B)
    if Bp != B:
        x_t = jnp.pad(x_t, ((0, 0), (0, Bp - B)))      # padded cols sliced off

    grid = (Bp // tb_eff,)

    out_t = pl.pallas_call(
        mlp_kernel,
        out_shape=jax.ShapeDtypeStruct((nu, Bp), out_dtype),
        grid=grid,
        in_specs=[
            pl.BlockSpec((nx, tb_eff), lambda i: (0, i)),   # x tile
            pl.BlockSpec((H, nx), lambda i: (0, 0)),        # W1^T (resident)
            pl.BlockSpec((H, 1), lambda i: (0, 0)),         # b1
            pl.BlockSpec((H, H), lambda i: (0, 0)),         # W2^T (resident)
            pl.BlockSpec((H, 1), lambda i: (0, 0)),         # b2
            pl.BlockSpec((nu, H), lambda i: (0, 0)),        # W3^T (resident)
            pl.BlockSpec((nu, 1), lambda i: (0, 0)),        # b3
        ],
        out_specs=pl.BlockSpec((nu, tb_eff), lambda i: (0, i)),
        compiler_params=pltpu.CompilerParams(
            dimension_semantics=("parallel",),
        ),
    )(x_t, w1_t, b1_t, w2_t, b2_t, w3_t, b3_t)

    return out_t[:, :B].T                              # (B, Nu), out_dtype


_nn_forward_jit = jax.jit(
    _nn_forward_impl, static_argnames=("tb", "out_dtype", "num_cores"))


def nn_forward(x, params, *, tb=512, out_dtype=jnp.bfloat16, num_cores=None):
    """Forward pass using pre-prepared params (see prepare_params)."""
    if num_cores is None:
        num_cores = _detect_num_tensorcores()
    return _nn_forward_jit(x, params, tb=int(tb), out_dtype=out_dtype,
                           num_cores=int(num_cores))


def init_params(key, Nx, Nu, H=128, dtype=jnp.float32):
    """Deterministic init mimicking PyTorch nn.Linear (uniform +/-1/sqrt(fan_in))."""
    ks = jax.random.split(key, 6)

    def lin(kw, kb, fan_in, fan_out):
        bound = 1.0 / jnp.sqrt(jnp.asarray(fan_in, dtype))
        w = jax.random.uniform(kw, (fan_in, fan_out), dtype, -bound, bound)
        b = jax.random.uniform(kb, (1, fan_out), dtype, -bound, bound)
        return w, b

    w1, b1 = lin(ks[0], ks[1], Nx, H)
    w2, b2 = lin(ks[2], ks[3], H, H)
    w3, b3 = lin(ks[4], ks[5], H, Nu)
    return w1, b1, w2, b2, w3, b3


def reference_forward_f32(x, w1, b1, w2, b2, w3, b3):
    h1 = jnp.maximum(x @ w1 + b1, 0.0)
    h2 = jnp.maximum(h1 @ w2 + b2, 0.0)
    return jnp.tanh(h2 @ w3 + b3)


# TODO(synk): NN.save() (torch.save) and NN.sample_action() (host-side
# epsilon-greedy with python random) have no Pallas equivalent; only the
# forward pass is implemented as a kernel.

if __name__ == "__main__":
    # Inverted-pendulum-ish dims: state dim Nx=4, action dim Nu=2, batch=8.
    Nx, Nu, B = 4, 2, 8
    key = jax.random.PRNGKey(0)
    kx, kp = jax.random.split(key)

    x = jax.random.normal(kx, (B, Nx), jnp.float32)
    raw_params = init_params(kp, Nx, Nu)
    ref = reference_forward_f32(x, *raw_params)

    # Default deployment path: bf16 MXU operands, bf16 output.
    params_bf16 = prepare_params(*raw_params, compute_dtype=jnp.bfloat16)
    out = jax.block_until_ready(nn_forward(x, params_bf16))
    assert out.shape == (B, Nu)
    assert jnp.allclose(out.astype(jnp.float32), ref, atol=2e-2, rtol=2e-2), \
        "bf16 mismatch vs reference"

    # Full-f32 path through the same kernel: near-exact sanity check.
    params_f32 = prepare_params(*raw_params, compute_dtype=jnp.float32)
    out_f32 = jax.block_until_ready(
        nn_forward(x, params_f32, out_dtype=jnp.float32))
    assert jnp.allclose(out_f32, ref, atol=1e-5, rtol=1e-5), "f32 mismatch"

    print("KERNEL_OK")
</pallas_src>

<mosaic_0001>
module attributes {stable_mosaic.version = 11 : i64} {
  func.func @mlp_kernel(%arg0: i32, %arg1: memref<4x128xf32, #tpu.memory_space<vmem>>, %arg2: memref<128x4xf32, #tpu.memory_space<vmem>>, %arg3: memref<128x1xf32, #tpu.memory_space<vmem>>, %arg4: memref<128x128xbf16, #tpu.memory_space<vmem>>, %arg5: memref<128x1xf32, #tpu.memory_space<vmem>>, %arg6: memref<2x128xbf16, #tpu.memory_space<vmem>>, %arg7: memref<2x1xf32, #tpu.memory_space<vmem>>, %arg8: memref<2x128xbf16, #tpu.memory_space<vmem>>) attributes {dimension_semantics = [#tpu.dimension_semantics<parallel>], iteration_bounds = array<i64: 1>, scalar_prefetch = 0 : i64, scratch_operands = 0 : i64, tpu.core_type = #tpu.core_type<tc>, window_params = [{transform_indices = @transform_0, window_bounds = array<i64: 4, 128>}, {pipeline_mode = #tpu.pipeline_mode<synchronous>, transform_indices = @transform_1, window_bounds = array<i64: 128, 4>}, {pipeline_mode = #tpu.pipeline_mode<synchronous>, transform_indices = @transform_2, window_bounds = array<i64: 128, 1>}, {pipeline_mode = #tpu.pipeline_mode<synchronous>, transform_indices = @transform_3, window_bounds = array<i64: 128, 128>}, {pipeline_mode = #tpu.pipeline_mode<synchronous>, transform_indices = @transform_4, window_bounds = array<i64: 128, 1>}, {pipeline_mode = #tpu.pipeline_mode<synchronous>, transform_indices = @transform_5, window_bounds = array<i64: 2, 128>}, {pipeline_mode = #tpu.pipeline_mode<synchronous>, transform_indices = @transform_6, window_bounds = array<i64: 2, 1>}, {transform_indices = @transform_7, window_bounds = array<i64: 2, 128>}]} {
    %c0 = arith.constant 0 : index
    %c0_0 = arith.constant 0 : index
    %0 = vector.load %arg1[%c0, %c0_0] : memref<4x128xf32, #tpu.memory_space<vmem>>, vector<4x128xf32>
    %c0_1 = arith.constant 0 : index
    %c0_2 = arith.constant 0 : index
    %1 = vector.load %arg2[%c0_1, %c0_2] : memref<128x4xf32, #tpu.memory_space<vmem>>, vector<128x4xf32>
    %c0_3 = arith.constant 0 : index
    %c0_4 = arith.constant 0 : index
    %2 = vector.load %arg3[%c0_3, %c0_4] : memref<128x1xf32, #tpu.memory_space<vmem>>, vector<128x1xf32>
    %3 = vector.shape_cast %2 : vector<128x1xf32> to vector<128x1xf32>
    %4 = vector.broadcast %3 : vector<128x1xf32> to vector<128x128xf32>
    %5 = vector.extract_strided_slice %1 {offsets = [0, 0], sizes = [128, 1], strides = [1, 1]} : vector<128x4xf32> to vector<128x1xf32>
    %6 = vector.extract_strided_slice %0 {offsets = [0, 0], sizes = [1, 128], strides = [1, 1]} : vector<4x128xf32> to vector<1x128xf32>
    %7 = vector.broadcast %5 : vector<128x1xf32> to vector<128x128xf32>
    %8 = vector.broadcast %6 : vector<1x128xf32> to vector<128x128xf32>
    %9 = arith.mulf %7, %8 : vector<128x128xf32>
    %10 = arith.addf %4, %9 : vector<128x128xf32>
    %11 = vector.extract_strided_slice %1 {offsets = [0, 1], sizes = [128, 1], strides = [1, 1]} : vector<128x4xf32> to vector<128x1xf32>
    %12 = vector.extract_strided_slice %0 {offsets = [1, 0], sizes = [1, 128], strides = [1, 1]} : vector<4x128xf32> to vector<1x128xf32>
    %13 = vector.broadcast %11 : vector<128x1xf32> to vector<128x128xf32>
    %14 = vector.broadcast %12 : vector<1x128xf32> to vector<128x128xf32>
    %15 = arith.mulf %13, %14 : vector<128x128xf32>
    %16 = arith.addf %10, %15 : vector<128x128xf32>
    %17 = vector.extract_strided_slice %1 {offsets = [0, 2], sizes = [128, 1], strides = [1, 1]} : vector<128x4xf32> to vector<128x1xf32>
    %18 = vector.extract_strided_slice %0 {offsets = [2, 0], sizes = [1, 128], strides = [1, 1]} : vector<4x128xf32> to vector<1x128xf32>
    %19 = vector.broadcast %17 : vector<128x1xf32> to vector<128x128xf32>
    %20 = vector.broadcast %18 : vector<1x128xf32> to vector<128x128xf32>
    %21 = arith.mulf %19, %20 : vector<128x128xf32>
    %22 = arith.addf %16, %21 : vector<128x128xf32>
    %23 = vector.extract_strided_slice %1 {offsets = [0, 3], sizes = [128, 1], strides = [1, 1]} : vector<128x4xf32> to vector<128x1xf32>
    %24 = vector.extract_strided_slice %0 {offsets = [3, 0], sizes = [1, 128], strides = [1, 1]} : vector<4x128xf32> to vector<1x128xf32>
    %25 = vector.broadcast %23 : vector<128x1xf32> to vector<128x128xf32>
    %26 = vector.broadcast %24 : vector<1x128xf32> to vector<128x128xf32>
    %27 = arith.mulf %25, %26 : vector<128x128xf32>
    %28 = arith.addf %22, %27 : vector<128x128xf32>
    %cst = arith.constant 0.000000e+00 : f32
    %29 = vector.broadcast %cst : f32 to vector<128x128xf32>
    %30 = arith.maximumf %28, %29 : vector<128x128xf32>
    %c0_5 = arith.constant 0 : index
    %c0_6 = arith.constant 0 : index
    %31 = vector.load %arg4[%c0_5, %c0_6] : memref<128x128xbf16, #tpu.memory_space<vmem>>, vector<128x128xbf16>
    %32 = arith.truncf %30 : vector<128x128xf32> to vector<128x128xbf16>
    %cst_7 = arith.constant dense<0.000000e+00> : vector<128x128xf32>
    %33 = tpu.matmul %31, %32, %cst_7 {dimension_numbers = #tpu.dot_dimension_numbers<[1], [0], [0], [1], [0, 0, 1, 1], [], []>} : vector<128x128xbf16>, vector<128x128xbf16>, vector<128x128xf32> -> vector<128x128xf32>
    %c0_8 = arith.constant 0 : index
    %c0_9 = arith.constant 0 : index
    %34 = vector.load %arg5[%c0_8, %c0_9] : memref<128x1xf32, #tpu.memory_space<vmem>>, vector<128x1xf32>
    %35 = vector.broadcast %34 : vector<128x1xf32> to vector<128x128xf32>
    %36 = arith.addf %33, %35 : vector<128x128xf32>
    %cst_10 = arith.constant 0.000000e+00 : f32
    %37 = vector.broadcast %cst_10 : f32 to vector<128x128xf32>
    %38 = arith.maximumf %36, %37 : vector<128x128xf32>
    %c0_11 = arith.constant 0 : index
    %c0_12 = arith.constant 0 : index
    %39 = vector.load %arg6[%c0_11, %c0_12] : memref<2x128xbf16, #tpu.memory_space<vmem>>, vector<2x128xbf16>
    %40 = arith.truncf %38 : vector<128x128xf32> to vector<128x128xbf16>
    %cst_13 = arith.constant dense<0.000000e+00> : vector<2x128xf32>
    %41 = tpu.matmul %39, %40, %cst_13 {dimension_numbers = #tpu.dot_dimension_numbers<[1], [0], [0], [1], [0, 0, 1, 1], [], []>} : vector<2x128xbf16>, vector<128x128xbf16>, vector<2x128xf32> -> vector<2x128xf32>
    %c0_14 = arith.constant 0 : index
    %c0_15 = arith.constant 0 : index
    %42 = vector.load %arg7[%c0_14, %c0_15] : memref<2x1xf32, #tpu.memory_space<vmem>>, vector<2x1xf32>
    %43 = vector.broadcast %42 : vector<2x1xf32> to vector<2x128xf32>
    %44 = arith.addf %41, %43 : vector<2x128xf32>
    %45 = math.tanh %44 : vector<2x128xf32>
    %46 = arith.truncf %45 : vector<2x128xf32> to vector<2x128xbf16>
    %c0_16 = arith.constant 0 : index
    %c0_17 = arith.constant 0 : index
    %47 = vector.load %arg8[%c0_16, %c0_17] : memref<2x128xbf16, #tpu.memory_space<vmem>>, vector<2x128xbf16>
    tpu.vector_store %arg8[%c0_16, %c0_17], %46 {strides = array<i32>} : memref<2x128xbf16, #tpu.memory_space<vmem>>, vector<2x128xbf16>,
    return
  }
  func.func @transform_0(%arg0: i32) -> (i32, i32) {
    %c0_i32 = arith.constant 0 : i32
    %c0_i32_0 = arith.constant 0 : i32
    return %c0_i32, %arg0 : i32, i32
  }
  func.func @transform_1(%arg0: i32) -> (i32, i32) {
    %c0_i32 = arith.constant 0 : i32
    %c0_i32_0 = arith.constant 0 : i32
    %c0_i32_1 = arith.constant 0 : i32
    return %c0_i32, %c0_i32_0 : i32, i32
  }
  func.func @transform_2(%arg0: i32) -> (i32, i32) {
    %c0_i32 = arith.constant 0 : i32
    %c0_i32_0 = arith.constant 0 : i32
    %c0_i32_1 = arith.constant 0 : i32
    return %c0_i32, %c0_i32_0 : i32, i32
  }
  func.func @transform_3(%arg0: i32) -> (i32, i32) {
    %c0_i32 = arith.constant 0 : i32
    %c0_i32_0 = arith.constant 0 : i32
    %c0_i32_1 = arith.constant 0 : i32
    return %c0_i32, %c0_i32_0 : i32, i32
  }
  func.func @transform_4(%arg0: i32) -> (i32, i32) {
    %c0_i32 = arith.constant 0 : i32
    %c0_i32_0 = arith.constant 0 : i32
    %c0_i32_1 = arith.constant 0 : i32
    return %c0_i32, %c0_i32_0 : i32, i32
  }
  func.func @transform_5(%arg0: i32) -> (i32, i32) {
    %c0_i32 = arith.constant 0 : i32
    %c0_i32_0 = arith.constant 0 : i32
    %c0_i32_1 = arith.constant 0 : i32
    return %c0_i32, %c0_i32_0 : i32, i32
  }
  func.func @transform_6(%arg0: i32) -> (i32, i32) {
    %c0_i32 = arith.constant 0 : i32
    %c0_i32_0 = arith.constant 0 : i32
    %c0_i32_1 = arith.constant 0 : i32
    return %c0_i32, %c0_i32_0 : i32, i32
  }
  func.func @transform_7(%arg0: i32) -> (i32, i32) {
    %c0_i32 = arith.constant 0 : i32
    %c0_i32_0 = arith.constant 0 : i32
    return %c0_i32, %arg0 : i32, i32
  }
}

</mosaic_0001>

<bundles_post_ra>
// kernel: _nn_forward_impl.1
= control target key start
LH: loop header
LB: loop body
LE: loop exit
PB: predicated region body
PF: predicated region fallthrough
CT: control target
= control target key end

     0   :  { %v1061_v0 = vmov 2   ;;  %v1062_v1 = vmov 0   ;;  %v1063_v8 = vmov 1   ;;  %v1064_v16 = vmov 3   ;;  %s1587_s2 = inlined_call_operand.vmem [shape: f32[128,1], index: 2, kind: input, shape index: {}]   ;;  %s1588_s1 = inlined_call_operand.vmem [shape: f32[128,4], index: 1, kind: input, shape index: {}]   ;;  %s1589_s0 = inlined_call_operand.vmem [shape: f32[4,128], index: 0, kind: input, shape index: {}]   ;;  %s1590_s3 = inlined_call_operand.vmem [shape: bf16[128,128], index: 3, kind: input, shape index: {}]   ;;  %s1591_s4 = inlined_call_operand.vmem [shape: f32[128,1], index: 4, kind: input, shape index: {}]   ;;  %s1592_s6 = inlined_call_operand.vmem [shape: f32[2,1], index: 6, kind: input, shape index: {}]   ;;  %s1593_s5 = inlined_call_operand.vmem [shape: bf16[2,128], index: 5, kind: input, shape index: {}]   ;;  %s1594_s7 = inlined_call_operand.vmem [shape: bf16[2,128], index: 7, kind: output, shape index: {}]  }
   0x1   :  { %1014 = vset.pattern.permute.xlu0 %v1061_v0  ;;  %1006 = vset.pattern.permute.xlu1 %v1062_v1  ;;  %v58_v2 = vld [vmem:[%s1587_s2 + $0x70] sm:$0xff]  ;;  %v1115_v3 = vld [vmem:[%s1588_s1 + $0x60] sm:$0xff]  ;;  %v59_v4 = vld [vmem:[%s1587_s2 + $0x78] sm:$0xff]  ;;  %v220_v63 = vlaneseq  ;;  %vm1066_vm0 = vmmov 0  }
   0x2   :  { %132 = vperm.xlu1 %1006, %v58_v2   ;;  %405 = vperm.xlu0 %1014, %v1115_v3   ;;  %v1124_v5 = vld [vmem:[%s1588_s1 + $0x40] sm:$0xff]  ;;  %v1135_v7 = vld [vmem:[%s1588_s1 + $0x78] sm:$0xff]  ;;  %v42_v9 = vld [vmem:[%s1588_s1 + $0x70] sm:$0xff] }
   0x3   :  { %v1130_v6 = vld [vmem:[%s1588_s1 + $0x20] sm:$0xff]  ;;  %v41_v10 = vld [vmem:[%s1588_s1 + $0x68] sm:$0xff]  ;;  %v55_v13 = vld [vmem:[%s1587_s2 + $0x58] sm:$0xff] }
   0x4   :  { %v56_v11 = vld [vmem:[%s1587_s2 + $0x60] sm:$0xff]  ;;  %v57_v12 = vld [vmem:[%s1587_s2 + $0x68] sm:$0xff]  ;;  %v51_v17 = vld [vmem:[%s1587_s2 + $0x38] sm:$0xff] }
   0x5   :  { %v1165_v14 = vld [vmem:[%s1588_s1 + $0x48] sm:$0xff]  ;;  %v52_v15 = vld [vmem:[%s1587_s2 + $0x40] sm:$0xff]  ;;  %v38_v18 = vld [vmem:[%s1588_s1 + $0x50] sm:$0xff] }
   0x6   :  { %137 = vperm.xlu1 %1006, %v59_v4   ;;  %389 = vperm.xlu0 %1014, %v1124_v5   ;;  %v1183_v19 = vld [vmem:[%s1588_s1 + $0x28] sm:$0xff]  ;;  %v39_v20 = vld [vmem:[%s1588_s1 + $0x58] sm:$0xff]  ;;  %v48_v21 = vld [vmem:[%s1587_s2 + $0x20] sm:$0xff]  ;;  %v221_v4 = vshrl.u32 %v220_v63, 7 }
   0x7   :  { %v47_v22 = vld [vmem:[%s1587_s2 + $0x18] sm:$0xff]  ;;  %v54_v23 = vld [vmem:[%s1587_s2 + $0x50] sm:$0xff]  ;;  %v1202_v24 = vld [vmem:[%s1588_s1 + $0x8] sm:$0xff] }
   0x8   :  { %v44_v25 = vld [vmem:[%s1587_s2] sm:$0xff]  ;;  %v53_v27 = vld [vmem:[%s1587_s2 + $0x48] sm:$0xff]  ;;  %v34_v28 = vld [vmem:[%s1588_s1 + $0x30] sm:$0xff] }
   0x9   :  { %v1220_v26 = vld [vmem:[%s1588_s1] sm:$0xff]  ;;  %v35_v29 = vld [vmem:[%s1588_s1 + $0x38] sm:$0xff]  ;;  %v50_v31 = vld [vmem:[%s1587_s2 + $0x30] sm:$0xff] }
   0xa   :  { %1007 = vset.pattern.permute.xlu1 %v1063_v8  ;;  %373 = vperm.xlu0 %1014, %v1130_v6   ;;  %v1246_v30 = vld [vmem:[%s1588_s1 + $0x18] sm:$0xff]  ;;  %v49_v45 = vld [vmem:[%s1587_s2 + $0x28] sm:$0xff]  ;;  %v1311_v53 = vld [vmem:[%s1588_s1 + $0x10] sm:$0xff] }
   0xb   :  { %317 = vperm.xlu1 %1007, %v1135_v7   ;;  %v46_v60 = vld [vmem:[%s1587_s2 + $0x10] sm:$0xff] }
   0xe   :  { %1035 = vset.pattern.permute.xlu0 %v1062_v1 }
   0xf   :  { %1008 = vset.pattern.permute.xlu1 %v1062_v1  ;;  %212 = vperm.xlu0 %1035, %v42_v9  }
  0x10   :  { %202 = vperm.xlu1 %1008, %v1115_v3  }
  0x13   :  { %217 = vperm.xlu0 %1035, %v1135_v7  }
  0x14   :  { %1009 = vset.pattern.permute.xlu1 %v1061_v0 }
  0x15   :  { %413 = vperm.xlu1 %1009, %v42_v9  }
  0x17   :  { %207 = vperm.xlu0 %1035, %v41_v10  }
  0x19   :  { %417 = vperm.xlu1 %1009, %v1135_v7  }
  0x1b   :  { %122 = vperm.xlu0 %1035, %v56_v11  }
  0x1d   :  { %1010 = vset.pattern.permute.xlu1 %v1062_v1 }
  0x1e   :  { %127 = vperm.xlu1 %1010, %v57_v12  }
  0x1f   :  { %117 = vperm.xlu0 %1035, %v55_v13  }
  0x22   :  { %1011 = vset.pattern.permute.xlu1 %v1063_v8 }
  0x23   :  { %309 = vperm.xlu1 %1011, %v41_v10   ;;  %187 = vperm.xlu0 %1035, %v1165_v14  }
  0x27   :  { %1012 = vset.pattern.permute.xlu1 %v1064_v16  ;;  %102 = vperm.xlu0 %1035, %v52_v15  }
  0x28   :  { %513 = vperm.xlu1 %1012, %v42_v9  }
  0x2b   :  { %97 = vperm.xlu0 %1035, %v51_v17  }
  0x2c   :  { %1013 = vset.pattern.permute.xlu1 %v1062_v1 }
  0x2d   :  { %192 = vperm.xlu1 %1013, %v38_v18  }
  0x2f   :  { %167 = vperm.xlu0 %1035, %v1183_v19  }
  0x31   :  { %197 = vperm.xlu1 %1013, %v39_v20  }
  0x33   :  { %82 = vperm.xlu0 %1035, %v48_v21  }
  0x35   :  { %1015 = vset.pattern.permute.xlu1 %v1061_v0 }
  0x36   :  { %409 = vperm.xlu1 %1015, %v41_v10  }
  0x37   :  { %77 = vperm.xlu0 %1035, %v47_v22  }
  0x3a   :  { %1016 = vset.pattern.permute.xlu1 %v1062_v1 }
  0x3b   :  { %112 = vperm.xlu1 %1016, %v54_v23   ;;  %147 = vperm.xlu0 %1035, %v1202_v24  }
  0x3f   :  { %1017 = vset.pattern.permute.xlu1 %v1063_v8  ;;  %62 = vperm.xlu0 %1035, %v44_v25  }
  0x40   :  { %297 = vperm.xlu1 %1017, %v38_v18  }
  0x43   :  { %1042 = vset.pattern.permute.xlu0 %v1063_v8 }
  0x44   :  { %301 = vperm.xlu1 %1017, %v39_v20   ;;  %313 = vperm.xlu0 %1042, %v42_v9   ;;  %v27_v9 = vld [vmem:[%s1589_s0] sm:$0xf] }
  0x48   :  { %1018 = vset.pattern.permute.xlu1 %v1064_v16  ;;  %305 = vperm.xlu0 %1042, %v1115_v3  }
  0x49   :  { %509 = vperm.xlu1 %1018, %v41_v10   ;;  %v322_v10 = vsub.s32 1, %v221_v4 }
  0x4b   :  { %v1352_v15 = vrot.slane %v27_v9, %v322_v10 }
  0x4c   :  { %289 = vperm.xlu0 %1042, %v1124_v5  }
  0x4d   :  { %1019 = vset.pattern.permute.xlu1 %v1062_v1 }
  0x4e   :  { %182 = vperm.xlu1 %1019, %v1124_v5  }
  0x50   :  { %273 = vperm.xlu0 %1042, %v1130_v6  }
  0x52   :  { %1020 = vset.pattern.permute.xlu1 %v1061_v0 }
  0x53   :  { %397 = vperm.xlu1 %1020, %v38_v18  }
  0x54   :  { %257 = vperm.xlu0 %1042, %v1220_v26  }
  0x57   :  { %401 = vperm.xlu1 %1020, %v39_v20  }
  0x58   :  { %1044 = vset.pattern.permute.xlu0 %v1064_v16 }
  0x59   :  { %517 = vperm.xlu0 %1044, %v1135_v7  }
  0x5b   :  { %1021 = vset.pattern.permute.xlu1 %v1062_v1 }
  0x5c   :  { %107 = vperm.xlu1 %1021, %v53_v27  }
  0x5d   :  { %505 = vperm.xlu0 %1044, %v1115_v3  }
  0x60   :  { %1022 = vset.pattern.permute.xlu1 %v1063_v8 }
  0x61   :  { %293 = vperm.xlu1 %1022, %v1165_v14   ;;  %501 = vperm.xlu0 %1044, %v39_v20  }
  0x65   :  { %1023 = vset.pattern.permute.xlu1 %v1064_v16  ;;  %489 = vperm.xlu0 %1044, %v1124_v5   ;;  %v222_v5 = vsub.s32 0, %v221_v4 }
  0x66   :  { %497 = vperm.xlu1 %1023, %v38_v18  }
  0x67   :  { %v1348_v11 = vrot.slane %v27_v9, %v222_v5 }
  0x69   :  { %485 = vperm.xlu0 %1044, %v35_v29  }
  0x6a   :  { %1024 = vset.pattern.permute.xlu1 %v1062_v1 }
  0x6b   :  { %172 = vperm.xlu1 %1024, %v34_v28  }
  0x6d   :  { %473 = vperm.xlu0 %1044, %v1130_v6  }
  0x6f   :  { %177 = vperm.xlu1 %1024, %v35_v29  }
  0x71   :  { %469 = vperm.xlu0 %1044, %v1246_v30  }
  0x73   :  { %1025 = vset.pattern.permute.xlu1 %v1061_v0 }
  0x74   :  { %393 = vperm.xlu1 %1025, %v1165_v14  }
  0x75   :  { %457 = vperm.xlu0 %1044, %v1220_v26  }
  0x78   :  { %1026 = vset.pattern.permute.xlu1 %v1062_v1 }
  0x79   :  { %92 = vperm.xlu1 %1026, %v50_v31   ;;  %1049 = vset.pattern.permute.xlu0 %v1062_v1 }
  0x7d   :  { %v1257_v32 = vpop.permute.xlu1 %132  ;;  %1027 = vset.pattern.permute.xlu1 %v1063_v8  ;;  %v1260_v33 = vpop.permute.xlu0 %405 }
  0x7e   :  { %281 = vperm.xlu1 %1027, %v34_v28  }
  0x81   :  { %v1262_v34 = vpop.permute.xlu1 %137  ;;  %v1264_v35 = vpop.permute.xlu0 %389 }
  0x82   :  { %285 = vperm.xlu1 %1027, %v35_v29  }
  0x85   :  { %v1266_v36 = vpop.permute.xlu0 %373 }
  0x86   :  { %v1268_v37 = vpop.permute.xlu1 %317  ;;  %1028 = vset.pattern.permute.xlu1 %v1064_v16 }
  0x87   :  { %493 = vperm.xlu1 %1028, %v1165_v14   ;;  %v422_v14 = vsub.s32 2, %v221_v4 }
  0x89   :  { %v1358_v22 = vrot.slane %v27_v9, %v422_v14 }
  0x8a   :  { %v1272_v38 = vpop.permute.xlu0 %212 }
  0x8b   :  { %v1274_v39 = vpop.permute.xlu1 %202  ;;  %1029 = vset.pattern.permute.xlu1 %v1062_v1  ;;  %v238_v17 = vmul.f32 %v1348_v11, %v1272_v38  ;;  %v432_v31 = vmul.f32 %v1358_v22, %v1264_v35  ;;  %v339_v35 = vmul.f32 %v1352_v15, %v1268_v37 }
  0x8c   :  { %162 = vperm.xlu1 %1029, %v1130_v6  }
  0x8e   :  { %v1278_v40 = vpop.permute.xlu0 %217 }
  0x8f   :  { %v239_v27 = vmul.f32 %v1348_v11, %v1278_v40 }
  0x90   :  { %v1280_v41 = vpop.permute.xlu1 %413  ;;  %1030 = vset.pattern.permute.xlu1 %v1061_v0 }
  0x91   :  { %381 = vperm.xlu1 %1030, %v34_v28   ;;  %v438_v40 = vmul.f32 %v1358_v22, %v1280_v41 }
  0x92   :  { %v1283_v42 = vpop.permute.xlu0 %207 }
  0x94   :  { %v1285_v43 = vpop.permute.xlu1 %417 }
  0x95   :  { %385 = vperm.xlu1 %1030, %v35_v29   ;;  %v439_v41 = vmul.f32 %v1358_v22, %v1285_v43 }
  0x96   :  { %v1287_v44 = vpop.permute.xlu0 %122 }
  0x99   :  { %v1292_v46 = vpop.permute.xlu1 %127  ;;  %1031 = vset.pattern.permute.xlu1 %v1062_v1 }
  0x9a   :  { %87 = vperm.xlu1 %1031, %v49_v45   ;;  %v1295_v47 = vpop.permute.xlu0 %117 }
  0x9e   :  { %v1297_v48 = vpop.permute.xlu1 %309  ;;  %1032 = vset.pattern.permute.xlu1 %v1063_v8  ;;  %v1300_v49 = vpop.permute.xlu0 %187 }
  0x9f   :  { %277 = vperm.xlu1 %1032, %v1183_v19  }
  0xa2   :  { %v103_v50 = vpop.permute.xlu0 %102 }
  0xa3   :  { %v1303_v51 = vpop.permute.xlu1 %513  ;;  %1033 = vset.pattern.permute.xlu1 %v1064_v16 }
  0xa4   :  { %481 = vperm.xlu1 %1033, %v34_v28   ;;  %v522_v28 = vsub.s32 3, %v221_v4 }
  0xa6   :  { %v1306_v52 = vpop.permute.xlu0 %97  ;;  %v1376_v4 = vrot.slane %v27_v9, %v522_v28 }
  0xa8   :  { %v1313_v54 = vpop.permute.xlu1 %192  ;;  %1034 = vset.pattern.permute.xlu1 %v1062_v1 }
  0xa9   :  { %152 = vperm.xlu1 %1034, %v1311_v53  }
  0xaa   :  { %v1317_v55 = vpop.permute.xlu0 %167 }
  0xac   :  { %v1319_v56 = vpop.permute.xlu1 %197 }
  0xad   :  { %157 = vperm.xlu1 %1034, %v1246_v30  }
  0xae   :  { %v1322_v57 = vpop.permute.xlu0 %82 }
  0xb1   :  { %v410_v58 = vpop.permute.xlu1 %409  ;;  %1036 = vset.pattern.permute.xlu1 %v1061_v0 }
  0xb2   :  { %377 = vperm.xlu1 %1036, %v1183_v19   ;;  %v1326_v59 = vpop.permute.xlu0 %77 }
  0xb6   :  { %v1331_v61 = vpop.permute.xlu1 %112  ;;  %1037 = vset.pattern.permute.xlu1 %v1062_v1  ;;  %v1334_v62 = vpop.permute.xlu0 %147 }
  0xb7   :  { %72 = vperm.xlu1 %1037, %v46_v60   ;;  %v237_v60 = vmul.f32 %v1348_v11, %v1283_v42  ;;  %v337_v42 = vmul.f32 %v1352_v15, %v1297_v48  ;;  %v538_v48 = vmul.f32 %v1376_v4, %v1303_v51 }
  0xb9   :  { %v253_v14 = vadd.f32 %v237_v60, %v1292_v46 }
  0xba   :  { %v1336_v2 = vpop.permute.xlu0 %62 }
  0xbb   :  { %v1338_v3 = vpop.permute.xlu1 %297  ;;  %1038 = vset.pattern.permute.xlu1 %v1063_v8  ;;  %v353_v43 = vadd.f32 %v337_v42, %v253_v14 }
  0xbc   :  { %265 = vperm.xlu1 %1038, %v1311_v53  }
  0xbf   :  { %v1342_v6 = vpop.permute.xlu1 %301  ;;  %v314_v7 = vpop.permute.xlu0 %313 }
  0xc0   :  { %269 = vperm.xlu1 %1038, %v1246_v30   ;;  %v338_v20 = vmul.f32 %v1352_v15, %v314_v7  ;;  %v335_v60 = vmul.f32 %v1352_v15, %v1342_v6 }
  0xc3   :  { %v306_v12 = vpop.permute.xlu0 %305 }
  0xc4   :  { %v510_v13 = vpop.permute.xlu1 %509  ;;  %1039 = vset.pattern.permute.xlu1 %v1064_v16  ;;  %v336_v10 = vmul.f32 %v1352_v15, %v306_v12 }
  0xc5   :  { %477 = vperm.xlu1 %1039, %v1183_v19   ;;  %v254_v19 = vadd.f32 %v238_v17, %v1257_v32  ;;  %v255_v32 = vadd.f32 %v239_v27, %v1262_v34  ;;  %v236_v34 = vmul.f32 %v1348_v11, %v1274_v39  ;;  %v437_v17 = vmul.f32 %v1358_v22, %v410_v58 }
  0xc6   :  { %v436_v39 = vmul.f32 %v1358_v22, %v1260_v33 }
  0xc7   :  { %v290_v18 = vpop.permute.xlu0 %289  ;;  %v354_v45 = vadd.f32 %v338_v20, %v254_v19  ;;  %v355_v37 = vadd.f32 %v339_v35, %v255_v32  ;;  %v252_v20 = vadd.f32 %v236_v34, %v1287_v44  ;;  %v45_v44 = vld [vmem:[%s1587_s2 + $0x8] sm:$0xff]  ;;  %v453_v19 = vadd.f32 %v437_v17, %v353_v43 }
  0xc8   :  { %v332_v23 = vmul.f32 %v1352_v15, %v290_v18 }
  0xc9   :  { %v183_v21 = vpop.permute.xlu1 %182  ;;  %1040 = vset.pattern.permute.xlu1 %v1062_v1  ;;  %v454_v9 = vadd.f32 %v438_v40, %v354_v45  ;;  %v352_v46 = vadd.f32 %v336_v10, %v252_v20  ;;  %v234_v40 = vmul.f32 %v1348_v11, %v1313_v54 }
  0xca   :  { %v232_v25 = vmul.f32 %v1348_v11, %v183_v21  ;;  %142 = vperm.xlu1 %1040, %v1220_v26   ;;  %v537_v21 = vmul.f32 %v1376_v4, %v510_v13 }
  0xcb   :  { %v1366_v29 = vpop.permute.xlu0 %273  ;;  %v250_v6 = vadd.f32 %v234_v40, %v1331_v61 }
  0xcc   :  { %v248_v38 = vadd.f32 %v232_v25, %v103_v50  ;;  %v554_v25 = vadd.f32 %v538_v48, %v454_v9  ;;  %v553_v33 = vadd.f32 %v537_v21, %v453_v19 }
  0xce   :  { %v348_v63 = vadd.f32 %v332_v23, %v248_v38  ;;  %v398_v5 = vpop.permute.xlu1 %397  ;;  %1041 = vset.pattern.permute.xlu1 %v1061_v0  ;;  %v455_v23 = vadd.f32 %v439_v41, %v355_v37  ;;  %v570_v45 = vmax.f32 %v554_v25, 0.0  ;;  %v569_v9 = vmax.f32 %v553_v33, 0.0 }
  0xcf   :  { %365 = vperm.xlu1 %1041, %v1311_v53   ;;  %v1379_v7 = vpop.permute.xlu0 %257  ;;  %v434_v54 = vmul.f32 %v1358_v22, %v398_v5 }
  0xd0   :  { %v1385_v50 = vadd.f32 %v432_v31, %v348_v63  ;;  %v452_v31 = vadd.f32 %v436_v39, %v352_v46  ;;  %v233_v46 = vmul.f32 %v1348_v11, %v1300_v49 }
  0xd2   :  { %v402_v18 = vpop.permute.xlu1 %401 }
  0xd3   :  { %369 = vperm.xlu1 %1041, %v1246_v30   ;;  %v235_v30 = vmul.f32 %v1348_v11, %v1319_v56  ;;  %v334_v56 = vmul.f32 %v1352_v15, %v1338_v3  ;;  %v435_v42 = vmul.f32 %v1358_v22, %v402_v18 }
  0xd4   :  { %v518_v12 = vpop.permute.xlu0 %517 }
  0xd5   :  { %v539_v58 = vmul.f32 %v1376_v4, %v518_v12  ;;  %v251_v35 = vadd.f32 %v235_v30, %v1295_v47  ;;  %v350_v17 = vadd.f32 %v334_v56, %v250_v6  ;;  %v607_v6 = vld [vmem:[%s1591_s4 + $0x58] sm:$0xff] }
  0xd7   :  { %v555_v51 = vadd.f32 %v539_v58, %v455_v23  ;;  %v1405_v27 = vpop.permute.xlu1 %107  ;;  %1043 = vset.pattern.permute.xlu1 %v1062_v1  ;;  %v351_v14 = vadd.f32 %v335_v60, %v251_v35 }
  0xd8   :  { %v506_v13 = vpop.permute.xlu0 %505  ;;  %67 = vperm.xlu1 %1043, %v45_v44  }
  0xd9   :  { %v571_v28 = vmax.f32 %v555_v51, 0.0  ;;  %v536_v38 = vmul.f32 %v1376_v4, %v506_v13  ;;  %v451_v18 = vadd.f32 %v435_v42, %v351_v14  ;;  %v611_v42 = vld [vmem:[%s1591_s4 + $0x78] sm:$0xff] }
  0xdb   :  { %v552_v63 = vadd.f32 %v536_v38, %v452_v31  ;;  %v595_v32 = vpack.c.bf16 %v571_v28, %v570_v45  ;;  %v328_v45 = vmul.f32 %v1352_v15, %v1366_v29  ;;  %v610_v29 = vld [vmem:[%s1591_s4 + $0x70] sm:$0xff] }
  0xdc   :  { %v294_v34 = vpop.permute.xlu1 %293  ;;  %v502_v41 = vpop.permute.xlu0 %501  ;;  %1045 = vset.pattern.permute.xlu1 %v1063_v8  ;;  %v450_v8 = vadd.f32 %v434_v54, %v350_v17  ;;  %684 = vperm.xlu0 %1049, %v610_v29  }
  0xdd   :  { %v568_v10 = vmax.f32 %v552_v63, 0.0  ;;  %261 = vperm.xlu1 %1045, %v1202_v24   ;;  %948 = vmatprep.subr.bf16.mxu0 %v595_v32  ;;  %v535_v47 = vmul.f32 %v1376_v4, %v502_v41  ;;  %v333_v44 = vmul.f32 %v1352_v15, %v294_v34 }
  0xde   :  { %949 = vmatpush3.bf16.msra.mxu0 %v595_v32  ;;  %v428_v32 = vmul.f32 %v1358_v22, %v1266_v36  ;;  %v608_v36 = vld [vmem:[%s1591_s4 + $0x60] sm:$0xff] }
  0xdf   :  { %v594_v3 = vpack.c.bf16 %v569_v9, %v568_v10  ;;  %v551_v20 = vadd.f32 %v535_v47, %v451_v18  ;;  %v606_v10 = vld [vmem:[%s1591_s4 + $0x50] sm:$0xff] }
  0xe0   :  { %v490_v58 = vpop.permute.xlu0 %489 }
  0xe1   :  { %v498_v37 = vpop.permute.xlu1 %497  ;;  %1046 = vset.pattern.permute.xlu1 %v1064_v16  ;;  %950 = vmatprep.subr.bf16.mxu0 %v594_v3  ;;  %v567_v39 = vmax.f32 %v551_v20, 0.0  ;;  %v605_v20 = vld [vmem:[%s1591_s4 + $0x48] sm:$0xff] }
  0xe2   :  { %v534_v48 = vmul.f32 %v1376_v4, %v498_v37  ;;  %465 = vperm.xlu1 %1046, %v1311_v53   ;;  %951 = vmatpush3.bf16.msra.mxu0 %v594_v3 }
  0xe4   :  { %v550_v61 = vadd.f32 %v534_v48, %v450_v8  ;;  %v486_v37 = vpop.permute.xlu0 %485  ;;  %v604_v8 = vld [vmem:[%s1591_s4 + $0x40] sm:$0xff] }
  0xe5   :  { %v531_v48 = vmul.f32 %v1376_v4, %v486_v37 }
  0xe6   :  { %v566_v5 = vmax.f32 %v550_v61, 0.0  ;;  %v173_v43 = vpop.permute.xlu1 %172  ;;  %1047 = vset.pattern.permute.xlu1 %v1061_v0  ;;  %v1051_v0 = vld [vmem:[%s1590_s3] sm:$0xff]  }
  0xe7   :  { %357 = vperm.xlu1 %1047, %v1220_v26   ;;  %964 = vmatprep.mubr.bf16.mxu0 %v1051_v0  ;;  %v230_v47 = vmul.f32 %v1348_v11, %v173_v43 }
  0xe8   :  { %v593_v21 = vpack.c.bf16 %v567_v39, %v566_v5 }
  0xea   :  { %v178_v12 = vpop.permute.xlu1 %177  ;;  %952 = vmatprep.subr.bf16.mxu0 %v593_v21 }
  0xeb   :  { %361 = vperm.xlu1 %1047, %v1202_v24   ;;  %953 = vmatpush3.bf16.msra.mxu0 %v593_v21  ;;  %v231_v34 = vmul.f32 %v1348_v11, %v178_v12  ;;  %v602_v21 = vld [vmem:[%s1591_s4 + $0x30] sm:$0xff]  ;;  %v603_v12 = vld [vmem:[%s1591_s4 + $0x38] sm:$0xff] }
  0xed   :  { %v247_v14 = vadd.f32 %v231_v34, %v1306_v52 }
  0xef   :  { %v394_v23 = vpop.permute.xlu1 %393  ;;  %1048 = vset.pattern.permute.xlu1 %v1064_v16  ;;  %v249_v16 = vadd.f32 %v233_v46, %v1405_v27  ;;  %v600_v46 = vld [vmem:[%s1591_s4 + $0x20] sm:$0xff] }
  0xf0   :  { %461 = vperm.xlu1 %1048, %v1202_v24   ;;  %v532_v24 = vmul.f32 %v1376_v4, %v490_v58  ;;  %v433_v19 = vmul.f32 %v1358_v22, %v394_v23  ;;  %v601_v58 = vld [vmem:[%s1591_s4 + $0x28] sm:$0xff] }
  0xf2   :  { %v548_v30 = vadd.f32 %v532_v24, %v1385_v50 }
  0xf4   :  { %v93_v53 = vpop.permute.xlu1 %92  ;;  %1050 = vset.pattern.permute.xlu1 %v1062_v1  ;;  %v349_v1 = vadd.f32 %v333_v44, %v249_v16  ;;  %v564_v31 = vmax.f32 %v548_v30, 0.0  ;;  %v596_v30 = vld [vmem:[%s1591_s4] sm:$0xff] }
  0xf5   :  { %689 = vperm.xlu1 %1050, %v611_v42   ;;  %v246_v52 = vadd.f32 %v230_v47, %v93_v53 }
  0xf6   :  { %v449_v33 = vadd.f32 %v433_v19, %v349_v1  ;;  %v598_v19 = vld [vmem:[%s1591_s4 + $0x10] sm:$0xff]  ;;  %v599_v1 = vld [vmem:[%s1591_s4 + $0x18] sm:$0xff] }
  0xf9   :  { %v282_v26 = vpop.permute.xlu1 %281  ;;  %674 = vperm.xlu1 %1050, %v608_v36  }
  0xfa   :  { %v330_v3 = vmul.f32 %v1352_v15, %v282_v26 }
  0xfc   :  { %v346_v5 = vadd.f32 %v330_v3, %v246_v52 }
  0xfd   :  { %v286_v25 = vpop.permute.xlu1 %285  ;;  %664 = vperm.xlu1 %1050, %v606_v10  }
  0xfe   :  { %v331_v9 = vmul.f32 %v1352_v15, %v286_v25 }
 0x100   :  { %v347_v17 = vadd.f32 %v331_v9, %v247_v14 }
 0x101   :  { %654 = vperm.xlu1 %1050, %v604_v8  }
 0x102   :  { %v494_v51 = vpop.permute.xlu1 %493 }
 0x103   :  { %v533_v13 = vmul.f32 %v1376_v4, %v494_v51 }
 0x105   :  { %v549_v28 = vadd.f32 %v533_v13, %v449_v33  ;;  %644 = vperm.xlu1 %1050, %v602_v21   ;;  %v597_v33 = vld [vmem:[%s1591_s4 + $0x8] sm:$0xff] }
 0x107   :  { %v565_v49 = vmax.f32 %v549_v28, 0.0  ;;  %v163_v38 = vpop.permute.xlu1 %162  ;;  %v862_v28 = vld [vmem:[%s1592_s6] sm:$0x3] }
 0x108   :  { %v228_v27 = vmul.f32 %v1348_v11, %v163_v38  ;;  %v474_v38 = vpop.permute.xlu0 %473 }
 0x109   :  { %v592_v60 = vpack.c.bf16 %v565_v49, %v564_v31  ;;  %634 = vperm.xlu1 %1050, %v600_v46  }
 0x10a   :  { %v244_v63 = vadd.f32 %v228_v27, %v1322_v57  ;;  %v609_v57 = vld [vmem:[%s1591_s4 + $0x68] sm:$0xff] }
 0x10b   :  { %954 = vmatprep.subr.bf16.mxu0 %v592_v60  ;;  %679 = vperm.xlu0 %1049, %v609_v57  }
 0x10c   :  { %v344_v50 = vadd.f32 %v328_v45, %v244_v63  ;;  %v382_v40 = vpop.permute.xlu1 %381  ;;  %955 = vmatpush3.bf16.msra.mxu0 %v592_v60  ;;  %v229_v45 = vmul.f32 %v1348_v11, %v1317_v55  ;;  %v528_v63 = vmul.f32 %v1376_v4, %v474_v38 }
 0x10d   :  { %v430_v61 = vmul.f32 %v1358_v22, %v382_v40  ;;  %624 = vperm.xlu1 %1050, %v598_v19  }
 0x10e   :  { %v1450_v35 = vadd.f32 %v428_v32, %v344_v50 }
 0x10f   :  { %669 = vperm.xlu0 %1049, %v607_v6   ;;  %v446_v23 = vadd.f32 %v430_v61, %v346_v5 }
 0x110   :  { %v386_v56 = vpop.permute.xlu1 %385  ;;  %v544_v42 = vadd.f32 %v528_v63, %v1450_v35  ;;  %v1055_v63 = vld [vmem:[%s1590_s3 + $0x20] sm:$0xff]  }
 0x111   :  { %v431_v54 = vmul.f32 %v1358_v22, %v386_v56  ;;  %614 = vperm.xlu1 %1050, %v596_v30  }
 0x112   :  { %v560_v34 = vmax.f32 %v544_v42, 0.0 }
 0x113   :  { %v447_v39 = vadd.f32 %v431_v54, %v347_v17  ;;  %659 = vperm.xlu0 %1049, %v605_v20   ;;  %v470_v20 = vpop.permute.xlu0 %469 }
 0x114   :  { %v527_v61 = vmul.f32 %v1376_v4, %v470_v20 }
 0x115   :  { %v1465_v41 = vpop.permute.xlu1 %87  ;;  %v547_v0 = vadd.f32 %v531_v48, %v447_v39  ;;  %865 = vperm.xlu1 %1050, %v862_v28  }
 0x116   :  { %v245_v32 = vadd.f32 %v229_v45, %v1465_v41 }
 0x117   :  { %649 = vperm.xlu0 %1049, %v603_v12   ;;  %v563_v44 = vmax.f32 %v547_v0, 0.0  ;;  %v458_v30 = vpop.permute.xlu0 %457 }
 0x118   :  { %v524_v28 = vmul.f32 %v1376_v4, %v458_v30 }
 0x11a   :  { %v278_v18 = vpop.permute.xlu1 %277 }
 0x11b   :  { %639 = vperm.xlu0 %1049, %v601_v58   ;;  %v329_v27 = vmul.f32 %v1352_v15, %v278_v18 }
 0x11d   :  { %v345_v40 = vadd.f32 %v329_v27, %v245_v32  ;;  %v1056_v32 = vld [vmem:[%s1590_s3 + $0x28] sm:$0xff]  }
 0x11f   :  { %v482_v43 = vpop.permute.xlu1 %481  ;;  %629 = vperm.xlu0 %1049, %v599_v1  }
 0x120   :  { %v530_v53 = vmul.f32 %v1376_v4, %v482_v43 }
 0x122   :  { %v546_v26 = vadd.f32 %v530_v53, %v446_v23 }
 0x123   :  { %619 = vperm.xlu0 %1049, %v597_v33  }
 0x124   :  { %v562_v25 = vmax.f32 %v546_v26, 0.0  ;;  %v153_v16 = vpop.permute.xlu1 %152 }
 0x125   :  { %v226_v17 = vmul.f32 %v1348_v11, %v153_v16 }
 0x126   :  { %v591_v24 = vpack.c.bf16 %v563_v44, %v562_v25  ;;  %v324_v44 = vmul.f32 %v1352_v15, %v1379_v7 }
 0x128   :  { %v158_v51 = vpop.permute.xlu1 %157  ;;  %956 = vmatprep.subr.bf16.mxu0 %v591_v24 }
 0x129   :  { %957 = vmatpush3.bf16.msra.mxu0 %v591_v24  ;;  %v227_v41 = vmul.f32 %v1348_v11, %v158_v51  ;;  %v225_v24 = vmul.f32 %v1348_v11, %v1334_v62 }
 0x12b   :  { %v243_v3 = vadd.f32 %v227_v41, %v1326_v59 }
 0x12d   :  { %v378_v13 = vpop.permute.xlu1 %377 }
 0x12e   :  { %v429_v50 = vmul.f32 %v1358_v22, %v378_v13 }
 0x130   :  { %v445_v29 = vadd.f32 %v429_v50, %v345_v40  ;;  %v1057_v50 = vld [vmem:[%s1590_s3 + $0x30] sm:$0xff]   ;;  %v1058_v40 = vld [vmem:[%s1590_s3 + $0x38] sm:$0xff]  }
 0x132   :  { %v73_v31 = vpop.permute.xlu1 %72 }
 0x133   :  { %v242_v52 = vadd.f32 %v226_v17, %v73_v31 }
 0x137   :  { %v266_v49 = vpop.permute.xlu1 %265 }
 0x138   :  { %v326_v18 = vmul.f32 %v1352_v15, %v266_v49 }
 0x13a   :  { %v342_v5 = vadd.f32 %v326_v18, %v242_v52 }
 0x13b   :  { %v270_v60 = vpop.permute.xlu1 %269 }
 0x13c   :  { %v327_v47 = vmul.f32 %v1352_v15, %v270_v60  ;;  %v1052_v60 = vld [vmem:[%s1590_s3 + $0x8] sm:$0xff]  }
 0x13e   :  { %v343_v37 = vadd.f32 %v327_v47, %v243_v3 }
 0x140   :  { %v478_v56 = vpop.permute.xlu1 %477 }
 0x141   :  { %v529_v36 = vmul.f32 %v1376_v4, %v478_v56  ;;  %v1065_v56 = vmov 0.0  }
 0x142   :  { %980 = vmatprep.subr.bf16.mxu1 %v1065_v56  ;;  %996 = vmatprep.mubr.msk.bf16.mxu1 %vm1066_vm0, %v1065_v56 }
 0x143   :  { %v545_v57 = vadd.f32 %v529_v36, %v445_v29 }
 0x145   :  { %v561_v9 = vmax.f32 %v545_v57, 0.0  ;;  %v143_v55 = vpop.permute.xlu1 %142 }
 0x146   :  { %v224_v21 = vmul.f32 %v1348_v11, %v143_v55 }
 0x147   :  { %v590_v10 = vpack.c.bf16 %v561_v9, %v560_v34 }
 0x148   :  { %v240_v53 = vadd.f32 %v224_v21, %v1336_v2 }
 0x149   :  { %958 = vmatprep.subr.bf16.mxu0 %v590_v10 }
 0x14a   :  { %v366_v6 = vpop.permute.xlu1 %365  ;;  %959 = vmatpush3.bf16.msra.mxu0 %v590_v10  ;;  %v340_v1 = vadd.f32 %v324_v44, %v240_v53 }
 0x14b   :  { %v426_v48 = vmul.f32 %v1358_v22, %v366_v6 }
 0x14d   :  { %v442_v59 = vadd.f32 %v426_v48, %v342_v5 }
 0x14e   :  { %v370_v14 = vpop.permute.xlu1 %369 }
 0x14f   :  { %v427_v35 = vmul.f32 %v1358_v22, %v370_v14 }
 0x151   :  { %v443_v39 = vadd.f32 %v427_v35, %v343_v37 }
 0x153   :  { %v68_v54 = vpop.permute.xlu1 %67  ;;  %v543_v12 = vadd.f32 %v527_v61, %v443_v39 }
 0x154   :  { %v241_v2 = vadd.f32 %v225_v24, %v68_v54 }
 0x155   :  { %v559_v26 = vmax.f32 %v543_v12, 0.0 }
 0x157   :  { %v685_v34 = vpop.permute.xlu0 %684 }
 0x158   :  { %v262_v8 = vpop.permute.xlu1 %261 }
 0x159   :  { %v325_v19 = vmul.f32 %v1352_v15, %v262_v8 }
 0x15b   :  { %v341_v7 = vadd.f32 %v325_v19, %v241_v2 }
 0x15d   :  { %v466_v43 = vpop.permute.xlu1 %465 }
 0x15e   :  { %v526_v23 = vmul.f32 %v1376_v4, %v466_v43 }
 0x160   :  { %v542_v0 = vadd.f32 %v526_v23, %v442_v59 }
 0x162   :  { %v558_v46 = vmax.f32 %v542_v0, 0.0  ;;  %v358_v58 = vpop.permute.xlu1 %357 }
 0x163   :  { %v424_v25 = vmul.f32 %v1358_v22, %v358_v58 }
 0x164   :  { %v589_v16 = vpack.c.bf16 %v559_v26, %v558_v46 }
 0x165   :  { %v440_v33 = vadd.f32 %v424_v25, %v340_v1 }
 0x166   :  { %v362_v51 = vpop.permute.xlu1 %361  ;;  %960 = vmatprep.subr.bf16.mxu0 %v589_v16 }
 0x167   :  { %961 = vmatpush3.bf16.msra.mxu0 %v589_v16  ;;  %v425_v13 = vmul.f32 %v1358_v22, %v362_v51  ;;  %v540_v49 = vadd.f32 %v524_v28, %v440_v33  ;;  %v1053_v22 = vld [vmem:[%s1590_s3 + $0x10] sm:$0xff]  }
 0x169   :  { %v441_v38 = vadd.f32 %v425_v13, %v341_v7  ;;  %v556_v11 = vmax.f32 %v540_v49, 0.0 }
 0x16b   :  { %v462_v31 = vpop.permute.xlu1 %461 }
 0x16c   :  { %v525_v45 = vmul.f32 %v1376_v4, %v462_v31  ;;  %v1054_v4 = vld [vmem:[%s1590_s3 + $0x18] sm:$0xff]  }
 0x16e   :  { %v541_v62 = vadd.f32 %v525_v45, %v441_v38 }
 0x170   :  { %v557_v15 = vmax.f32 %v541_v62, 0.0  ;;  %v690_v55 = vpop.permute.xlu1 %689 }
 0x172   :  { %v588_v27 = vpack.c.bf16 %v557_v15, %v556_v11 }
 0x174   :  { %962 = vmatprep.subr.bf16.mxu0 %v588_v27  ;;  %v675_v54 = vpop.permute.xlu1 %674 }
 0x175   :  { %963 = vmatpush3.bf16.msra.mxu0 %v588_v27 }
 0x178   :  { %965 = vmatmul.mubr.bf16.vlgmr.msra.gmra.mxu0 %v1052_v60  ;;  %v665_v18 = vpop.permute.xlu1 %664 }
 0x179   :  { %968 = vmatprep.mubr.bf16.mxu0 %v1053_v22 }
 0x17c   :  { %v655_v61 = vpop.permute.xlu1 %654 }
 0x180   :  { %969 = vmatmul.mubr.bf16.gmra.mxu0 %v1054_v4  ;;  %v645_v58 = vpop.permute.xlu1 %644 }
 0x181   :  { %972 = vmatprep.mubr.bf16.mxu0 %v1055_v63 }
 0x184   :  { %v635_v2 = vpop.permute.xlu1 %634 }
 0x186   :  { %v680_v14 = vpop.permute.xlu0 %679 }
 0x188   :  { %973 = vmatmul.mubr.bf16.gmra.mxu0 %v1056_v32  ;;  %v625_v11 = vpop.permute.xlu1 %624 }
 0x189   :  { %976 = vmatprep.mubr.bf16.mxu0 %v1057_v50 }
 0x18a   :  { %v670_v35 = vpop.permute.xlu0 %669 }
 0x18e   :  { %v660_v20 = vpop.permute.xlu0 %659 }
 0x190   :  { %977 = vmatmul.mubr.bf16.gmra.mxu0 %v1058_v40  ;;  %v615_v40 = vpop.permute.xlu1 %614 }
 0x192   :  { %v650_v0 = vpop.permute.xlu0 %649 }
 0x196   :  { %v640_v1 = vpop.permute.xlu0 %639 }
 0x19a   :  { %v630_v49 = vpop.permute.xlu0 %629 }
 0x19e   :  { %v620_v63 = vpop.permute.xlu0 %619 }
 0x238   :  { %v1565_v42 = vpop.f32.mrf.mxu0 }
 0x239   :  { %v783_v32 = vadd.f32 %v1565_v42, %v625_v11 }
 0x23a   :  { %v1567_v29 = vpop.f32.mrf.mxu0 }
 0x23c   :  { %v967_v36 = vpop.f32.mrf.mxu0 }
 0x23d   :  { %v786_v60 = vadd.f32 %v967_v36, %v630_v49 }
 0x23e   :  { %v1569_v57 = vpop.f32.mrf.mxu0 }
 0x240   :  { %v970_v9 = vpop.f32.mrf.mxu0 }
 0x241   :  { %v799_v7 = vadd.f32 %v970_v9, %v645_v58  ;;  %v778_v9 = vadd.f32 %v1569_v57, %v620_v63  ;;  %v866_v57 = vpop.permute.xlu1 %865 }
 0x242   :  { %v790_v10 = vpop.f32.mrf.mxu0 }
 0x243   :  { %v843_v15 = vmax.f32 %v799_v7, 0.0  ;;  %v791_v27 = vadd.f32 %v790_v10, %v635_v2  ;;  %v775_v10 = vadd.f32 %v1567_v29, %v615_v40 }
 0x244   :  { %v971_v6 = vpop.f32.mrf.mxu0 }
 0x245   :  { %v802_v33 = vadd.f32 %v971_v6, %v650_v0  ;;  %v841_v50 = vmax.f32 %v791_v27, 0.0  ;;  %v839_v6 = vmax.f32 %v783_v32, 0.0 }
 0x246   :  { %v793_v41 = vpop.f32.mrf.mxu0 }
 0x247   :  { %v844_v38 = vmax.f32 %v802_v33, 0.0  ;;  %v794_v45 = vadd.f32 %v793_v41, %v640_v1  ;;  %v837_v41 = vmax.f32 %v775_v10, 0.0 }
 0x248   :  { %v974_v47 = vpop.f32.mrf.mxu0 }
 0x249   :  { %v815_v44 = vadd.f32 %v974_v47, %v665_v18  ;;  %v857_v22 = vpack.c.bf16 %v844_v38, %v843_v15  ;;  %v842_v4 = vmax.f32 %v794_v45, 0.0 }
 0x24a   :  { %v806_v3 = vpop.f32.mrf.mxu0 }
 0x24b   :  { %v847_v51 = vmax.f32 %v815_v44, 0.0  ;;  %v807_v30 = vadd.f32 %v806_v3, %v655_v61 }
 0x24c   :  { %v975_v17 = vpop.f32.mrf.mxu0 }
 0x24d   :  { %v818_v53 = vadd.f32 %v975_v17, %v670_v35  ;;  %v845_v31 = vmax.f32 %v807_v30, 0.0 }
 0x24e   :  { %v809_v37 = vpop.f32.mrf.mxu0 }
 0x24f   :  { %v848_v16 = vmax.f32 %v818_v53, 0.0  ;;  %v810_v24 = vadd.f32 %v809_v37, %v660_v20 }
 0x250   :  { %v978_v8 = vpop.f32.mrf.mxu0 }
 0x251   :  { %v831_v48 = vadd.f32 %v978_v8, %v685_v34  ;;  %v859_v13 = vpack.c.bf16 %v848_v16, %v847_v51  ;;  %v846_v28 = vmax.f32 %v810_v24, 0.0  ;;  %v840_v34 = vmax.f32 %v786_v60, 0.0 }
 0x252   :  { %v822_v52 = vpop.f32.mrf.mxu0 }
 0x253   :  { %v851_v21 = vmax.f32 %v831_v48, 0.0  ;;  %v823_v59 = vadd.f32 %v822_v52, %v675_v54  ;;  %v858_v62 = vpack.c.bf16 %v846_v28, %v845_v31  ;;  %v855_v36 = vpack.c.bf16 %v840_v34, %v839_v6  ;;  %v853_v54 = vld [vmem:[%s1593_s5] sm:$0x1] }
 0x254   :  { %v979_v39 = vpop.f32.mrf.mxu0 }
 0x255   :  { %v834_v5 = vadd.f32 %v979_v39, %v690_v55  ;;  %v849_v25 = vmax.f32 %v823_v59, 0.0  ;;  %v856_v55 = vpack.c.bf16 %v842_v4, %v841_v50 }
 0x256   :  { %v825_v43 = vpop.f32.mrf.mxu0 }
 0x257   :  { %v852_v12 = vmax.f32 %v834_v5, 0.0  ;;  %v826_v23 = vadd.f32 %v825_v43, %v680_v14  ;;  %v838_v14 = vmax.f32 %v778_v9, 0.0 }
 0x259   :  { %v850_v26 = vmax.f32 %v826_v23, 0.0  ;;  %v861_v46 = vpack.c.bf16 %v852_v12, %v851_v21  ;;  %v854_v42 = vpack.c.bf16 %v838_v14, %v837_v41 }
 0x25b   :  { %981 = vmatpush3.bf16.msra.mxu1 %v861_v46  ;;  %v860_v19 = vpack.c.bf16 %v850_v26, %v849_v25 }
 0x25c   :  { %982 = vmatprep.subr.bf16.mxu1 %v1065_v56 }
 0x25f   :  { %983 = vmatpush3.bf16.msra.mxu1 %v860_v19 }
 0x260   :  { %984 = vmatprep.subr.bf16.mxu1 %v1065_v56 }
 0x263   :  { %985 = vmatpush3.bf16.msra.mxu1 %v859_v13 }
 0x264   :  { %986 = vmatprep.subr.bf16.mxu1 %v1065_v56 }
 0x267   :  { %987 = vmatpush3.bf16.msra.mxu1 %v858_v62 }
 0x268   :  { %988 = vmatprep.subr.bf16.mxu1 %v1065_v56 }
 0x26b   :  { %989 = vmatpush3.bf16.msra.mxu1 %v857_v22 }
 0x26c   :  { %990 = vmatprep.subr.bf16.mxu1 %v1065_v56 }
 0x26f   :  { %991 = vmatpush3.bf16.msra.mxu1 %v856_v55 }
 0x270   :  { %992 = vmatprep.subr.bf16.mxu1 %v1065_v56 }
 0x273   :  { %993 = vmatpush3.bf16.msra.mxu1 %v855_v36 }
 0x274   :  { %994 = vmatprep.subr.bf16.mxu1 %v1065_v56 }
 0x277   :  { %995 = vmatpush3.bf16.msra.mxu1 %v854_v42 }
 0x27a   :  { %997 = vmatmul.mubr.bf16.vlgmr.msra.gmra.mxu1 %v853_v54 }
 0x33a   :  { %v902_v47 = vpop.f32.mrf.mxu1 }
 0x33b   :  { %v903_v3 = vadd.f32 %v902_v47, %v866_v57 }
 0x33c   :  { %v998_v29 = vpop.f32.mrf.mxu1 }
 0x33d   :  { %1059 = vtanh.f32 %v903_v3 }
 0x33e   :  { %v905_v35 = vpop.f32.mrf.mxu1 }
 0x340   :  { %v999_v17 = vpop.f32.mrf.mxu1 }
 0x34a   :  { %v1060_v18 = vpop.eup %1059 }
 0x34b   :  { %v909_v37 = vpack.c.bf16 %v1060_v18, %v1060_v18 }
 0x34d   :  { %910 = vst [vmem:[%s1594_s7] sm:$0x1] %v909_v37 }

</bundles_post_ra>
